<compile_context>
chip_gen: v7x
topology: tpu7x:2x2x1
jax: 0.10.0
libtpu: 0.0.40
codegen_flags: <defaults>
</compile_context>

<pallas_src>
import functools

import jax
import jax.numpy as jnp
from jax import lax
from jax.experimental import pallas as pl
from jax.experimental.pallas import tpu as pltpu

_LANES = 128
_MAX_TILE = 2048
_TARGET_STEPS = 8
_VMEM_BUDGET = 8 << 20      # comfortably inside the 16 MiB scoped default on v5e
_NEG_MASK = 1e12            # matches torch: eye(B) * 1000000000000.0


def _softmax_kernel(sim_ref, w_ref, *, inv_temp):
    """Masked, temperature-scaled, numerically-stable row softmax (B, B)."""
    s = sim_ref[...].astype(jnp.float32) * inv_temp
    b = s.shape[0]
    row = lax.broadcasted_iota(jnp.int32, (b, b), 0)
    col = lax.broadcasted_iota(jnp.int32, (b, b), 1)
    s = s - jnp.where(row == col, jnp.float32(_NEG_MASK), jnp.float32(0.0))
    m = jnp.max(s, axis=-1, keepdims=True)
    p = jnp.exp(s - m)
    w_ref[...] = p / jnp.sum(p, axis=-1, keepdims=True)


def _rebuild_kernel(w_ref, emb_ref, out_ref):
    """(B, B) @ (B, tn) streaming matmul, f32 accumulation on the MXU."""
    e = emb_ref[...]
    w = w_ref[...].astype(e.dtype)   # cast the tiny W, not the big tile
    out_ref[...] = jnp.dot(
        w, e, preferred_element_type=jnp.float32
    ).astype(out_ref.dtype)


def _pick_tile(d, b, in_bytes, out_bytes):
    """Lane tile for the streaming pass (multiple of 128, VMEM-budgeted)."""
    d_pad = pl.cdiv(d, _LANES) * _LANES
    # VMEM per lane column per step: double-buffered input + output tiles
    # (the resident (B, B) W block is negligible).
    per_lane = 2 * b * (in_bytes + out_bytes)
    vmem_cap = max(_LANES, ((_VMEM_BUDGET // per_lane) // _LANES) * _LANES)
    # Aim for >= _TARGET_STEPS grid steps (pipelining + both v7x cores busy),
    # but keep blocks >= 512 lanes so the ~0.35 us/step overhead stays hidden.
    tn = (d_pad // _TARGET_STEPS // _LANES) * _LANES
    tn = max(tn, 512)
    tn = min(tn, _MAX_TILE, vmem_cap, d_pad)
    return max(tn, _LANES)


def aggregation_rebuild(similarity_matrix, batch_emb_om, temperature):
    """Pallas equivalent of AggregationRebuild.forward."""
    b = batch_emb_om.shape[0]
    c = batch_emb_om.shape[1]
    assert similarity_matrix.shape == (b, b), "similarity matrix must be (B, B)"

    # 1) Tiny single-step kernel: masked, scaled softmax -> W (B, B) f32.
    w = pl.pallas_call(
        functools.partial(_softmax_kernel, inv_temp=1.0 / float(temperature)),
        out_shape=jax.ShapeDtypeStruct((b, b), jnp.float32),
    )(similarity_matrix)

    # 2) Streaming rebuild: W @ E over lane-dense tiles, no pad / no post-slice.
    emb = batch_emb_om.reshape(b, -1)                 # (B, D), native dtype
    d = emb.shape[1]
    out_dtype = batch_emb_om.dtype
    tn = _pick_tile(d, b, jnp.dtype(emb.dtype).itemsize,
                    jnp.dtype(out_dtype).itemsize)
    grid = (pl.cdiv(d, tn),)

    reb = pl.pallas_call(
        _rebuild_kernel,
        out_shape=jax.ShapeDtypeStruct((b, d), out_dtype),
        grid_spec=pltpu.PrefetchScalarGridSpec(
            num_scalar_prefetch=0,
            grid=grid,
            in_specs=(
                pl.BlockSpec((b, b), lambda j: (0, 0)),   # W resident in VMEM
                pl.BlockSpec((b, tn), lambda j: (0, j)),  # streamed emb tile
            ),
            out_specs=pl.BlockSpec((b, tn), lambda j: (0, j)),
        ),
        compiler_params=pltpu.CompilerParams(
            dimension_semantics=("parallel",),            # independent steps
        ),
    )(w, emb)

    return w, reb.reshape(b, c, -1)


def _reference(sim, emb, temperature):
    b, c = emb.shape[0], emb.shape[1]
    s = sim.astype(jnp.float32) / temperature
    s = s - jnp.eye(b, dtype=jnp.float32) * _NEG_MASK
    w = jax.nn.softmax(s, axis=-1)
    reb = w @ emb.reshape(b, -1).astype(jnp.float32)
    return w, reb.reshape(b, c, -1).astype(emb.dtype)


if __name__ == "__main__":
    key = jax.random.PRNGKey(0)
    temperature = 0.2

    ok = True
    # Case 1: lane-aligned D (B=8, seq=8, hidden=32 -> D=256).
    # Case 2: ragged D (B=8, C=4, 72 -> D=288) -> cdiv grid with masked edge.
    for shape in ((8, 8, 32), (8, 4, 72)):
        b = shape[0]
        k1, k2, key = jax.random.split(key, 3)
        sim = jax.random.normal(k1, (b, b), dtype=jnp.float32)
        emb = jax.random.normal(k2, shape, dtype=jnp.float32)

        w, reb = aggregation_rebuild(sim, emb, temperature)
        w, reb = jax.block_until_ready((w, reb))

        w_ref, reb_ref = _reference(sim, emb, temperature)
        ok &= bool(jnp.allclose(w, w_ref, rtol=1e-4, atol=1e-6))
        ok &= bool(jnp.allclose(reb, reb_ref, rtol=1e-3, atol=1e-5))

    assert ok, "kernel output mismatch vs reference"
    print("KERNEL_OK")
</pallas_src>

<mosaic_0001>
module attributes {stable_mosaic.version = 11 : i64} {
  func.func @_softmax_kernel(%arg0: memref<8x8xf32, #tpu.memory_space<vmem>>, %arg1: memref<8x8xf32, #tpu.memory_space<vmem>>) attributes {dimension_semantics = [], scalar_prefetch = 0 : i64, scratch_operands = 0 : i64, tpu.core_type = #tpu.core_type<tc>} {
    %c0 = arith.constant 0 : index
    %c0_0 = arith.constant 0 : index
    %0 = vector.load %arg0[%c0, %c0_0] : memref<8x8xf32, #tpu.memory_space<vmem>>, vector<8x8xf32>
    %cst = arith.constant 5.000000e+00 : f32
    %1 = vector.broadcast %cst : f32 to vector<8x8xf32>
    %2 = arith.mulf %0, %1 : vector<8x8xf32>
    %3 = tpu.iota {dimensions = array<i32: 0>} : vector<8x8xi32>
    %4 = tpu.iota {dimensions = array<i32: 1>} : vector<8x8xi32>
    %5 = arith.cmpi eq, %3, %4 : vector<8x8xi32>
    %cst_1 = arith.constant 9.99999995E+11 : f32
    %cst_2 = arith.constant 0.000000e+00 : f32
    %6 = vector.broadcast %cst_1 : f32 to vector<8x8xf32>
    %7 = vector.broadcast %cst_2 : f32 to vector<8x8xf32>
    %8 = arith.select %5, %6, %7 : vector<8x8xi1>, vector<8x8xf32>
    %9 = arith.subf %2, %8 : vector<8x8xf32>
    %cst_3 = arith.constant dense<0xFF800000> : vector<8xf32>
    %10 = vector.multi_reduction <maximumf>, %9, %cst_3 [1] : vector<8x8xf32> to vector<8xf32>
    %11 = vector.shape_cast %10 : vector<8xf32> to vector<8x1xf32>
    %12 = vector.broadcast %11 : vector<8x1xf32> to vector<8x8xf32>
    %13 = arith.subf %9, %12 : vector<8x8xf32>
    %14 = math.exp %13 : vector<8x8xf32>
    %cst_4 = arith.constant dense<0.000000e+00> : vector<8xf32>
    %15 = vector.multi_reduction <add>, %14, %cst_4 [1] : vector<8x8xf32> to vector<8xf32>
    %16 = vector.shape_cast %15 : vector<8xf32> to vector<8x1xf32>
    %17 = vector.broadcast %16 : vector<8x1xf32> to vector<8x8xf32>
    %18 = arith.divf %14, %17 : vector<8x8xf32>
    %c0_5 = arith.constant 0 : index
    %c0_6 = arith.constant 0 : index
    %19 = vector.load %arg1[%c0_5, %c0_6] : memref<8x8xf32, #tpu.memory_space<vmem>>, vector<8x8xf32>
    tpu.vector_store %arg1[%c0_5, %c0_6], %18 {strides = array<i32>} : memref<8x8xf32, #tpu.memory_space<vmem>>, vector<8x8xf32>,
    return
  }
}

</mosaic_0001>

<bundles_post_ra>
// kernel: tpu_custom_call.1
= control target key start
LH: loop header
LB: loop body
LE: loop exit
PB: predicated region body
PF: predicated region fallthrough
CT: control target
= control target key end

     0   :  { %6 = vsyncpa [#allocation3], 0  ;;  %s153_s0 = inlined_call_operand.hbm [shape: f32[8,8], index: 0, kind: input, shape index: {}]   ;;  %s154_s1 = inlined_call_operand.hbm [shape: f32[8,8], index: 1, kind: output, shape index: {}]  }
   0x1   :  { %7 = vsyncpa [#allocation4], 0  ;;  %s113_s6 = smov [#allocation2]   ;;  %s65_s10 = scalar_lea.hbm %s153_s0, 128 }
   0x2   :  { %s14_s7 = sshll.u32 %s113_s6, 4  ;;  %p66_p0 = scmp.ne.s32.totalorder %s153_s0, %s65_s10  ;;  %s15_s7 = int_to_ptr.vmem [resolvable:$true] %s14_s7 }
   0x3   :  { %p69_p1 = scmp.lt.u32.totalorder %s65_s10, %s153_s0 }
   0x5   :  { %p71_p2 = pnand %p69_p1, %p66_p0 }
   0x7   :  { %74 = shalt.err (!%p71_p2)
}
   0x8   :  { %s75_s15 = scalar_lea.vmem %s15_s7, 128  ;;  %p80_p4 = scmp.lt.s32.totalorder %s15_s7, %s15_s7 }
   0x9   :  { %p76_p3 = scmp.ne.s32.totalorder %s15_s7, %s75_s15  ;;  %p81_p5 = scmp.lt.s32.totalorder %s75_s15, %s75_s15 }
   0xb   :  { %p82_p6 = por %p81_p5, %p80_p4 }
   0xd   :  { %p83_p7 = pnand %p82_p6, %p76_p3 }
   0xf   :  { %86 = shalt.err (!%p83_p7)
}
  0x10   :  { %17 = dma.hbm_to_vmem [thread:$0]  %s153_s0, 128, %s15_s7, [#allocation3]  }
  0x11   :  { %109 = dma.done.wait [#allocation3], 128  }
  0x12   :  { %110 = vsyncadd [#allocation3], 4294967168  ;;  %v23_v0 = vlaneseq  ;;  %v21_v3 = vld [vmem:[#allocation2] sm:$0xff]  ;;  %v114_v4 = vmov 0.0   ;;  %vm30_vm1 = vcmask 64512   ;;  %s115_s0 = smov [#allocation5]  }
  0x13   :  { %v22_v6 = vmul.f32 5.0, %v21_v3  ;;  %s49_s18 = sshll.u32 %s115_s0, 4  ;;  %s50_s18 = int_to_ptr.vmem [resolvable:$true] %s49_s18 }
  0x14   :  { %v24_v1 = vshrl.u32 %v23_v0, 7  ;;  %v26_v2 = vand.u32 127, %v23_v0  ;;  %s87_s19 = scalar_lea.vmem %s50_s18, 128  ;;  %p92_p9 = scmp.lt.s32.totalorder %s50_s18, %s50_s18 }
  0x15   :  { %p88_p8 = scmp.ne.s32.totalorder %s50_s18, %s87_s19  ;;  %p93_p10 = scmp.lt.s32.totalorder %s87_s19, %s87_s19 }
  0x16   :  { %vm27_vm0 = vcmp.eq.s32.totalorder %v24_v1, %v26_v2 }
  0x17   :  { %v28_v5 = vsel %vm27_vm0, 1e+12, %v114_v4  ;;  %p94_p11 = por %p93_p10, %p92_p9 }
  0x18   :  { %v29_v7 = vsub.f32 %v22_v6, %v28_v5 }
  0x19   :  { %p95_p12 = pnand %p94_p11, %p88_p8 }
  0x1a   :  { %v31_v8 = vsel %vm30_vm1, %v29_v7, -inf }
  0x1b   :  { %32 = vmax.xlane.f32.xlu0 %v31_v8 }
  0xa8   :  { %v33_v9 = vpop.xlane.xlu0 %32 }
  0xa9   :  { %v34_v10 = vsub.f32 %v29_v7, %v33_v9 }
  0xab   :  { %v35_v11 = vmul.f32 1.442695, %v34_v10 }
  0xad   :  { %61 = vpow2.f32 %v35_v11 }
  0xb7   :  { %v62_v12 = vpop.eup %61 }
  0xb8   :  { %v37_v13 = vsel %vm30_vm1, %v62_v12, 0.0 }
  0xb9   :  { %38 = vadd.xlane.f32.xlu0 %v37_v13 }
 0x146   :  { %v39_v14 = vpop.xlane.xlu0 %38 }
 0x147   :  { %63 = vrcp.f32 %v39_v14 }
 0x151   :  { %v64_v15 = vpop.eup %63 }
 0x152   :  { %v41_v16 = vmul.f32 %v64_v15, %v62_v12 }
 0x154   :  { %42 = vst.msk [vmem:[#allocation5] sm:$0xff] %vm30_vm1, %v41_v16 }
 0x155   :  { %98 = shalt.err (!%p95_p12)
}
 0x156   :  { %s99_s22 = scalar_lea.hbm %s154_s1, 128 }
 0x157   :  { %p100_p13 = scmp.ne.s32.totalorder %s154_s1, %s99_s22  ;;  %p103_p0 = scmp.lt.u32.totalorder %s99_s22, %s154_s1 }
 0x159   :  { %p105_p1 = pnand %p103_p0, %p100_p13 }
 0x15b   :  { %108 = shalt.err (!%p105_p1)
}
 0x15c   :  { %52 = dma.vmem_to_hbm [thread:$0]  %s50_s18, 128, %s154_s1, [#allocation4]  }
 0x15d   :  { %111 = dma.done.wait [#allocation4], 128  }
 0x15e   :  { %112 = vsyncadd [#allocation4], 4294967168 }
 0x15f   :  { %56 = vsyncpa [#allocation3], 1 }
 0x160   :  { %57 = vsyncpa [#allocation4], 1 }

</bundles_post_ra>
